<compile_context>
chip_gen: v7x
topology: tpu7x:2x2x1
jax: 0.10.0
libtpu: 0.0.40
codegen_flags: <defaults>
</compile_context>

<pallas_src>
import functools
import math

import jax
import jax.numpy as jnp
import numpy as np
from jax.experimental import pallas as pl
from jax.experimental.pallas import tpu as pltpu


def _layernorm_kernel(x_ref, g_ref, o_ref, *, eps, c, inv_c):
    # x_ref: (rt, nt)  rt rows = whole batch elements (rt % c == 0), lanes dense
    # g_ref: (rt, 1)   per-row scale (g repeated for each batch element in the tile)
    # o_ref: (rt, nt)
    x = x_ref[...].astype(jnp.float32)                   # dense (rt, nt) slab
    rt, nt = x.shape
    groups = rt // c

    xg = x.reshape(groups, c, nt)                        # one batch element per group
    mean = jnp.sum(xg, axis=1, keepdims=True) * inv_c    # (groups, 1, nt)
    xc = xg - mean
    var = jnp.sum(xc * xc, axis=1, keepdims=True) * inv_c
    inv_std = jax.lax.rsqrt(var + eps)                   # EUP slot
    y = (xc * inv_std).reshape(rt, nt)                   # back to dense layout
    y = y * g_ref[...].astype(jnp.float32)               # (rt,1) broadcast over lanes
    o_ref[...] = y.astype(o_ref.dtype)


def _pick_tiles(rows, n, c):
    """Choose (row_tile, lane_tile): dense, VMEM-safe, whole batch elems per tile."""
    # Lane tile: largest multiple of 128 dividing N, capped; full N otherwise
    # (non-128-multiple N -> masked partial stores, correct but slower).
    lane_cap = 32768
    if n % 128 == 0:
        nt = 128
        cand = (min(n, lane_cap) // 128) * 128
        while cand >= 128:
            if n % cand == 0:
                nt = cand
                break
            cand -= 128
    else:
        nt = n

    # Row tile: whole batch elements (multiple of c), sublane-aligned when it
    # actually tiles, and small enough that the f32 working tile stays well
    # inside the default scoped VMEM on all chip generations.
    budget = 2 * 1024 * 1024  # bytes of f32 per tile
    if rows * nt * 4 <= budget:
        rt = rows                      # single row-step (EDSR config lands here)
    else:
        unit = (8 * c) // math.gcd(8, c)   # lcm(8, c): sublane + channel alignment
        rt = rows
        k = max(budget // (unit * nt * 4), 1)
        while k >= 1:
            cand = k * unit
            if cand <= rows and rows % cand == 0:
                rt = cand
                break
            k -= 1
    return rt, nt


def layernorm_pallas(x_nchw, g):
    """x_nchw: (b, C, H, W).  g: (1, C, 1, 1) or (C,).  Returns (b, C, H, W)."""
    b, c, hh, ww = x_nchw.shape
    n = hh * ww
    rows = b * c
    eps = 1e-5 if x_nchw.dtype == jnp.float32 else 1e-3

    # NCHW is contiguous: (b*C, H*W) is a free view — batch fills the sublane axis.
    x2 = x_nchw.reshape(rows, n)
    # Per-row scale: rows are batch-major, so g repeats once per batch element.
    g_rows = jnp.tile(g.reshape(c), (b,)).reshape(rows, 1)

    rt, nt = _pick_tiles(rows, n, c)
    grid = (rows // rt, n // nt)

    kernel = functools.partial(_layernorm_kernel, eps=eps, c=c, inv_c=1.0 / c)

    itemsize = jnp.dtype(x_nchw.dtype).itemsize
    cost = pl.CostEstimate(
        flops=7 * rows * n,
        transcendentals=b * n,
        bytes_accessed=2 * rows * n * itemsize + rows * 4,
    )

    out = pl.pallas_call(
        kernel,
        out_shape=jax.ShapeDtypeStruct((rows, n), x_nchw.dtype),
        grid_spec=pltpu.PrefetchScalarGridSpec(
            num_scalar_prefetch=0,
            grid=grid,
            in_specs=[
                pl.BlockSpec((rt, nt), lambda i, j: (i, j)),   # x tile (dense)
                pl.BlockSpec((rt, 1), lambda i, j: (i, 0)),    # per-row scale
            ],
            out_specs=pl.BlockSpec((rt, nt), lambda i, j: (i, j)),
        ),
        compiler_params=pltpu.CompilerParams(
            dimension_semantics=("parallel", "parallel")),
        cost_estimate=cost,
    )(x2, g_rows)

    return out.reshape(b, c, hh, ww)


def layernorm_reference(x_nchw, g):
    """Pure-JAX reference matching the PyTorch forward exactly."""
    eps = 1e-5 if x_nchw.dtype == jnp.float32 else 1e-3
    mean = jnp.mean(x_nchw, axis=1, keepdims=True)
    var = jnp.mean((x_nchw - mean) ** 2, axis=1, keepdims=True)  # unbiased=False
    c = x_nchw.shape[1]
    return (x_nchw - mean) * jax.lax.rsqrt(var + eps) * g.reshape(1, c, 1, 1)


if __name__ == "__main__":
    # Module config matching the EDSR usage: dim=4 channels, 16x16 feature map.
    b, dim, hh, ww = 2, 4, 16, 16

    key = jax.random.PRNGKey(0)
    k_x, k_g = jax.random.split(key, 2)

    x = jax.random.normal(k_x, (b, dim, hh, ww), dtype=jnp.float32)
    # nn.Parameter initialized to ones; perturb it so the scale path is tested.
    g = 1.0 + 0.1 * jax.random.normal(k_g, (1, dim, 1, 1), dtype=jnp.float32)

    out = jax.block_until_ready(layernorm_pallas(x, g))

    ref = layernorm_reference(x, g)
    np.testing.assert_allclose(np.asarray(out), np.asarray(ref),
                               rtol=1e-5, atol=1e-5)

    print("KERNEL_OK")
</pallas_src>

<mosaic_0001>
module attributes {stable_mosaic.version = 11 : i64} {
  func.func @_layernorm_kernel(%arg0: i32, %arg1: i32, %arg2: memref<8x256xf32, #tpu.memory_space<vmem>>, %arg3: memref<8x1xf32, #tpu.memory_space<vmem>>, %arg4: memref<8x256xf32, #tpu.memory_space<vmem>>) attributes {dimension_semantics = [#tpu.dimension_semantics<parallel>, #tpu.dimension_semantics<parallel>], iteration_bounds = array<i64: 1, 1>, scalar_prefetch = 0 : i64, scratch_operands = 0 : i64, tpu.core_type = #tpu.core_type<tc>, window_params = [{transform_indices = @transform_0, window_bounds = array<i64: 8, 256>}, {transform_indices = @transform_1, window_bounds = array<i64: 8, 1>}, {transform_indices = @transform_2, window_bounds = array<i64: 8, 256>}]} {
    %c0 = arith.constant 0 : index
    %c0_0 = arith.constant 0 : index
    %0 = vector.load %arg2[%c0, %c0_0] : memref<8x256xf32, #tpu.memory_space<vmem>>, vector<8x256xf32>
    %1 = vector.shape_cast %0 : vector<8x256xf32> to vector<2x4x256xf32>
    %cst = arith.constant dense<0.000000e+00> : vector<2x256xf32>
    %2 = vector.multi_reduction <add>, %1, %cst [1] : vector<2x4x256xf32> to vector<2x256xf32>
    %3 = vector.shape_cast %2 : vector<2x256xf32> to vector<2x1x256xf32>
    %cst_1 = arith.constant 2.500000e-01 : f32
    %4 = vector.broadcast %cst_1 : f32 to vector<2x1x256xf32>
    %5 = arith.mulf %3, %4 : vector<2x1x256xf32>
    %6 = vector.broadcast %5 : vector<2x1x256xf32> to vector<2x4x256xf32>
    %7 = arith.subf %1, %6 : vector<2x4x256xf32>
    %8 = arith.mulf %7, %7 : vector<2x4x256xf32>
    %cst_2 = arith.constant dense<0.000000e+00> : vector<2x256xf32>
    %9 = vector.multi_reduction <add>, %8, %cst_2 [1] : vector<2x4x256xf32> to vector<2x256xf32>
    %10 = vector.shape_cast %9 : vector<2x256xf32> to vector<2x1x256xf32>
    %cst_3 = arith.constant 2.500000e-01 : f32
    %11 = vector.broadcast %cst_3 : f32 to vector<2x1x256xf32>
    %12 = arith.mulf %10, %11 : vector<2x1x256xf32>
    %cst_4 = arith.constant 9.99999974E-6 : f32
    %13 = vector.broadcast %cst_4 : f32 to vector<2x1x256xf32>
    %14 = arith.addf %12, %13 : vector<2x1x256xf32>
    %15 = math.rsqrt %14 : vector<2x1x256xf32>
    %16 = vector.broadcast %15 : vector<2x1x256xf32> to vector<2x4x256xf32>
    %17 = arith.mulf %7, %16 : vector<2x4x256xf32>
    %18 = vector.shape_cast %17 : vector<2x4x256xf32> to vector<8x256xf32>
    %c0_5 = arith.constant 0 : index
    %c0_6 = arith.constant 0 : index
    %19 = vector.load %arg3[%c0_5, %c0_6] : memref<8x1xf32, #tpu.memory_space<vmem>>, vector<8x1xf32>
    %20 = vector.broadcast %19 : vector<8x1xf32> to vector<8x256xf32>
    %21 = arith.mulf %18, %20 : vector<8x256xf32>
    %c0_7 = arith.constant 0 : index
    %c0_8 = arith.constant 0 : index
    %22 = vector.load %arg4[%c0_7, %c0_8] : memref<8x256xf32, #tpu.memory_space<vmem>>, vector<8x256xf32>
    tpu.vector_store %arg4[%c0_7, %c0_8], %21 {strides = array<i32>} : memref<8x256xf32, #tpu.memory_space<vmem>>, vector<8x256xf32>,
    return
  }
  func.func @transform_0(%arg0: i32, %arg1: i32) -> (i32, i32) {
    %c0_i32 = arith.constant 0 : i32
    return %arg0, %arg1 : i32, i32
  }
  func.func @transform_1(%arg0: i32, %arg1: i32) -> (i32, i32) {
    %c0_i32 = arith.constant 0 : i32
    %c0_i32_0 = arith.constant 0 : i32
    return %arg0, %c0_i32 : i32, i32
  }
  func.func @transform_2(%arg0: i32, %arg1: i32) -> (i32, i32) {
    %c0_i32 = arith.constant 0 : i32
    return %arg0, %arg1 : i32, i32
  }
}

</mosaic_0001>

<bundles_post_ra>
// kernel: tpu_custom_call.1
= control target key start
LH: loop header
LB: loop body
LE: loop exit
PB: predicated region body
PF: predicated region fallthrough
CT: control target
= control target key end

     0   :  { %7 = vsyncpa [#allocation3], 0  ;;  %s306_s0 = inlined_call_operand.hbm [shape: f32[8,256], index: 0, kind: input, shape index: {}]   ;;  %s307_s1 = inlined_call_operand.vmem [shape: f32[8,1], index: 1, kind: input, shape index: {}]   ;;  %s308_s2 = inlined_call_operand.hbm [shape: f32[8,256], index: 2, kind: output, shape index: {}]  }
   0x1   :  { %8 = vsyncpa [#allocation4], 0  ;;  %s251_s9 = smov [#allocation2]   ;;  %s203_s13 = scalar_lea.hbm %s306_s0, 256 }
   0x2   :  { %s15_s10 = sshll.u32 %s251_s9, 4  ;;  %p204_p0 = scmp.ne.s32.totalorder %s306_s0, %s203_s13  ;;  %s16_s10 = int_to_ptr.vmem [resolvable:$true] %s15_s10 }
   0x3   :  { %p207_p1 = scmp.lt.u32.totalorder %s203_s13, %s306_s0 }
   0x5   :  { %p209_p2 = pnand %p207_p1, %p204_p0 }
   0x7   :  { %212 = shalt.err (!%p209_p2)
}
   0x8   :  { %s213_s18 = scalar_lea.vmem %s16_s10, 256  ;;  %p218_p4 = scmp.lt.s32.totalorder %s16_s10, %s16_s10 }
   0x9   :  { %p214_p3 = scmp.ne.s32.totalorder %s16_s10, %s213_s18  ;;  %p219_p5 = scmp.lt.s32.totalorder %s213_s18, %s213_s18 }
   0xb   :  { %p220_p6 = por %p219_p5, %p218_p4 }
   0xd   :  { %p221_p7 = pnand %p220_p6, %p214_p3 }
   0xf   :  { %224 = shalt.err (!%p221_p7)
}
  0x10   :  { %18 = dma.hbm_to_vmem [thread:$0]  %s306_s0, 256, %s16_s10, [#allocation3]  }
  0x11   :  { %247 = dma.done.wait [#allocation3], 256  }
  0x12   :  { %248 = vsyncadd [#allocation3], 4294967040  ;;  %v252_v0 = vmov 0   ;;  %v137_v1 = vld [vmem:[%s307_s1] sm:$0xff]  ;;  %v25_v3 = vld [vmem:[#allocation2 + $0x8] sm:$0xff]  ;;  %vm36_vm0 = vcmask 1043456  }
  0x13   :  { %190 = vset.pattern.permute.xlu0 %v252_v0  ;;  %v24_v2 = vld [vmem:[#allocation2] sm:$0xff]  ;;  %v183_v5 = vcombine.low %v25_v3, %v25_v3  ;;  %v184_v7 = vcombine.high %v25_v3, %v25_v3  ;;  %s255_s0 = smov [#allocation5]  }
  0x14   :  { %140 = vperm.xlu0 %190, %v137_v1   ;;  %v28_v4 = vcombine.low %v24_v2, %v25_v3  ;;  %v29_v6 = vcombine.high %v24_v2, %v25_v3  ;;  %s174_s1 = sshll.u32 %s255_s0, 4  ;;  %s175_s1 = int_to_ptr.vmem [resolvable:$true] %s174_s1 }
  0x15   :  { %v44_v9 = vsel %vm36_vm0, %v183_v5, 0.0  ;;  %v58_v11 = vsel %vm36_vm0, %v184_v7, 0.0  ;;  %s225_s23 = scalar_lea.vmem %s175_s1, 256  ;;  %p230_p9 = scmp.lt.s32.totalorder %s175_s1, %s175_s1 }
  0x16   :  { %v37_v8 = vsel %vm36_vm0, %v28_v4, 0.0  ;;  %v51_v10 = vsel %vm36_vm0, %v29_v6, 0.0  ;;  %v45_v13 = vrot.slane %v44_v9, 4  ;;  %v59_v15 = vrot.slane %v58_v11, 4  ;;  %p226_p8 = scmp.ne.s32.totalorder %s175_s1, %s225_s23  ;;  %p231_p10 = scmp.lt.s32.totalorder %s225_s23, %s225_s23 }
  0x17   :  { %v38_v12 = vrot.slane %v37_v8, 4  ;;  %v52_v14 = vrot.slane %v51_v10, 4 }
  0x18   :  { %v46_v17 = vadd.f32 %v45_v13, %v44_v9  ;;  %v60_v19 = vadd.f32 %v59_v15, %v58_v11  ;;  %p232_p11 = por %p231_p10, %p230_p9 }
  0x19   :  { %v39_v16 = vadd.f32 %v38_v12, %v37_v8  ;;  %v53_v18 = vadd.f32 %v52_v14, %v51_v10 }
  0x1a   :  { %v47_v21 = vrot.slane %v46_v17, 2  ;;  %v61_v23 = vrot.slane %v60_v19, 2  ;;  %p233_p12 = pnand %p232_p11, %p226_p8 }
  0x1b   :  { %v40_v20 = vrot.slane %v39_v16, 2  ;;  %v54_v22 = vrot.slane %v53_v18, 2 }
  0x1c   :  { %v48_v25 = vadd.f32 %v47_v21, %v46_v17  ;;  %v62_v27 = vadd.f32 %v61_v23, %v60_v19  ;;  %v253_v21 = vmov 839922192   ;;  %v145_v23 = vlaneseq }
  0x1d   :  { %v41_v24 = vadd.f32 %v40_v20, %v39_v16  ;;  %v55_v26 = vadd.f32 %v54_v22, %v53_v18  ;;  %v143_v22 = vunpack.c.l.s4 %v253_v21 }
  0x1e   :  { %v49_v29 = vrot.slane %v48_v25, 1  ;;  %v63_v31 = vrot.slane %v62_v27, 1 }
  0x1f   :  { %v42_v28 = vrot.slane %v41_v24, 1  ;;  %v56_v30 = vrot.slane %v55_v26, 1 }
  0x20   :  { %v50_v33 = vadd.f32 %v49_v29, %v48_v25  ;;  %v64_v35 = vadd.f32 %v63_v31, %v62_v27  ;;  %v144_v29 = vunpack.c.0.s8 %v143_v22 }
  0x21   :  { %v43_v32 = vadd.f32 %v42_v28, %v41_v24  ;;  %v57_v34 = vadd.f32 %v56_v30, %v55_v26  ;;  %v254_v24 = vmov 1985246804   ;;  %v146_v30 = vshrl.u32 %v145_v23, 7 }
  0x22   :  { %v66_v37 = vmul.f32 0.25, %v50_v33  ;;  %v68_v39 = vmul.f32 0.25, %v64_v35  ;;  %v150_v25 = vunpack.c.l.s4 %v254_v24 }
  0x23   :  { %v65_v36 = vmul.f32 0.25, %v43_v32  ;;  %v67_v38 = vmul.f32 0.25, %v57_v34  ;;  %v147_v34 = vsub.s32 %v144_v29, %v146_v30 }
  0x24   :  { %v151_v31 = vunpack.c.0.s8 %v150_v25 }
  0x25   :  { %v73_v40 = vcombine.low %v65_v36, %v66_v37  ;;  %v74_v41 = vcombine.low %v67_v38, %v68_v39 }
  0x26   :  { %v154_v35 = vsub.s32 %v151_v31, %v146_v30 }
  0x27   :  { %v77_v42 = vsub.f32 %v28_v4, %v73_v40  ;;  %v78_v43 = vsub.f32 %v29_v6, %v74_v41 }
  0x29   :  { %v79_v44 = vmul.f32 %v77_v42, %v77_v42  ;;  %v80_v45 = vmul.f32 %v78_v43, %v78_v43 }
  0x2b   :  { %v83_v46 = vcombine.high %v79_v44, %v79_v44  ;;  %v84_v47 = vcombine.high %v80_v45, %v80_v45  ;;  %v87_v48 = vsel %vm36_vm0, %v79_v44, 0.0  ;;  %v101_v49 = vsel %vm36_vm0, %v80_v45, 0.0 }
  0x2c   :  { %v88_v51 = vrot.slane %v87_v48, 4  ;;  %v102_v53 = vrot.slane %v101_v49, 4 }
  0x2d   :  { %v94_v50 = vsel %vm36_vm0, %v83_v46, 0.0  ;;  %v108_v52 = vsel %vm36_vm0, %v84_v47, 0.0 }
  0x2e   :  { %v95_v54 = vrot.slane %v94_v50, 4  ;;  %v109_v55 = vrot.slane %v108_v52, 4  ;;  %v89_v56 = vadd.f32 %v88_v51, %v87_v48  ;;  %v103_v57 = vadd.f32 %v102_v53, %v101_v49 }
  0x30   :  { %v96_v58 = vadd.f32 %v95_v54, %v94_v50  ;;  %v110_v59 = vadd.f32 %v109_v55, %v108_v52  ;;  %v90_v60 = vrot.slane %v89_v56, 2  ;;  %v104_v61 = vrot.slane %v103_v57, 2 }
  0x32   :  { %v97_v62 = vrot.slane %v96_v58, 2  ;;  %v111_v63 = vrot.slane %v110_v59, 2  ;;  %v91_v0 = vadd.f32 %v90_v60, %v89_v56  ;;  %v105_v1 = vadd.f32 %v104_v61, %v103_v57 }
  0x34   :  { %v98_v2 = vadd.f32 %v97_v62, %v96_v58  ;;  %v112_v3 = vadd.f32 %v111_v63, %v110_v59  ;;  %v92_v4 = vrot.slane %v91_v0, 1  ;;  %v106_v5 = vrot.slane %v105_v1, 1 }
  0x36   :  { %v99_v6 = vrot.slane %v98_v2, 1  ;;  %v113_v7 = vrot.slane %v112_v3, 1  ;;  %v93_v8 = vadd.f32 %v92_v4, %v91_v0  ;;  %v107_v9 = vadd.f32 %v106_v5, %v105_v1 }
  0x38   :  { %v100_v10 = vadd.f32 %v99_v6, %v98_v2  ;;  %v114_v11 = vadd.f32 %v113_v7, %v112_v3  ;;  %v115_v12 = vmul.f32 0.25, %v93_v8  ;;  %v117_v13 = vmul.f32 0.25, %v107_v9 }
  0x3a   :  { %v116_v14 = vmul.f32 0.25, %v100_v10  ;;  %v118_v15 = vmul.f32 0.25, %v114_v11  ;;  %v119_v16 = vadd.f32 1e-05, %v115_v12  ;;  %v121_v17 = vadd.f32 1e-05, %v117_v13 }
  0x3c   :  { %v120_v18 = vadd.f32 1e-05, %v116_v14  ;;  %v122_v19 = vadd.f32 1e-05, %v118_v15  ;;  %195 = vrsqrt.f32 %v119_v16 }
  0x3d   :  { %197 = vrsqrt.f32 %v121_v17 }
  0x3e   :  { %199 = vrsqrt.f32 %v120_v18 }
  0x3f   :  { %201 = vrsqrt.f32 %v122_v19 }
  0x46   :  { %v196_v20 = vpop.eup %195 }
  0x47   :  { %v198_v26 = vpop.eup %197 }
  0x48   :  { %v200_v27 = vpop.eup %199 }
  0x49   :  { %v202_v28 = vpop.eup %201  ;;  %v131_v32 = vcombine.low %v196_v20, %v200_v27 }
  0x4a   :  { %v132_v33 = vcombine.low %v198_v26, %v202_v28 }
  0x4b   :  { %v135_v36 = vmul.f32 %v131_v32, %v77_v42 }
  0x4c   :  { %v136_v37 = vmul.f32 %v132_v33, %v78_v43 }
  0x93   :  { %v141_v38 = vpop.permute.xlu0 %140 }
  0x94   :  { %v148_v39 = vrot.slane %v141_v38, %v147_v34  ;;  %v155_v40 = vrot.slane %v141_v38, %v154_v35 }
  0x96   :  { %v158_v41 = vmul.f32 %v148_v39, %v135_v36  ;;  %v159_v44 = vmul.f32 %v155_v40, %v136_v37 }
  0x98   :  { %v162_v45 = vcombine.low %v158_v41, %v159_v44  ;;  %v163_v46 = vcombine.high %v158_v41, %v159_v44 }
  0x9a   :  { %166 = vst [vmem:[#allocation5] sm:$0xff] %v162_v45  ;;  %167 = vst [vmem:[#allocation5 + $0x8] sm:$0xff] %v163_v46 }
  0x9b   :  { %236 = shalt.err (!%p233_p12)
}
  0x9c   :  { %s237_s26 = scalar_lea.hbm %s308_s2, 256 }
  0x9d   :  { %p238_p13 = scmp.ne.s32.totalorder %s308_s2, %s237_s26  ;;  %p241_p0 = scmp.lt.u32.totalorder %s237_s26, %s308_s2 }
  0x9f   :  { %p243_p1 = pnand %p241_p0, %p238_p13 }
  0xa1   :  { %246 = shalt.err (!%p243_p1)
}
  0xa2   :  { %177 = dma.vmem_to_hbm [thread:$0]  %s175_s1, 256, %s308_s2, [#allocation4]  }
  0xa3   :  { %249 = dma.done.wait [#allocation4], 256  }
  0xa4   :  { %250 = vsyncadd [#allocation4], 4294967040 }
  0xa5   :  { %181 = vsyncpa [#allocation3], 1 }
  0xa6   :  { %182 = vsyncpa [#allocation4], 1 }

</bundles_post_ra>
